<compile_context>
chip_gen: v7x
topology: tpu7x:2x2x1
jax: 0.10.0
libtpu: 0.0.40
codegen_flags: <defaults>
</compile_context>

<pallas_src>
import functools

import jax
import jax.numpy as jnp
from jax import lax
from jax.experimental import pallas as pl
from jax.experimental.pallas import tpu as pltpu

GAMMA = 2.0
ALPHA = 1.0

_LANES = 128
_SUBLANES = 8
_VMEM_LIMIT = 32 * 1024 * 1024


def _cdiv(a, b):
    return (a + b - 1) // b


def _round_up(a, b):
    return _cdiv(a, b) * b


def _device_kind():
    try:
        return jax.devices()[0].device_kind.lower()
    except Exception:  # pragma: no cover
        return ""


def _tensorcores_per_chip(kind):
    # Megacore chips (2 TensorCores behind one device): v4, v5p, v7x.
    return 2 if any(tag in kind for tag in ("v4", "v5p", "v7", "tpu7")) else 1


def _max_tile_rows(kind):
    # v7x: 3.2 TB/s per TC -> bigger tiles to amortize ~0.35us/step overhead.
    return 4096 if ("v7" in kind or "tpu7" in kind) else 1024


# ---------------------------------------------------------------------------
# Pass 1: global sum of BCE-with-logits.
#   bce(x, t) = max(x, 0) - x*t + log1p(exp(-|x|))
# ---------------------------------------------------------------------------
def _bce_sum_kernel(x_ref, t_ref, out_ref, acc_ref, *,
                    tile_rows, tiles_per_core, n_blocks, full_rows, lane_rem,
                    needs_tail_mask, single_step, emit_scalar, inv_count):
    x = x_ref[...].astype(jnp.float32)
    t = t_ref[...].astype(jnp.float32)
    bce = jnp.maximum(x, 0.0) - x * t + jnp.log1p(jnp.exp(-jnp.abs(x)))

    def tail_mask(block_idx):
        # Row-based validity (no row*128 multiply -> no int32 overflow for any
        # realistic tensor: only requires rows < 2**31).
        grow = block_idx * tile_rows + lax.broadcasted_iota(
            jnp.int32, (tile_rows, _LANES), 0)
        valid = grow < full_rows
        if lane_rem:
            lane = lax.broadcasted_iota(jnp.int32, (tile_rows, _LANES), 1)
            valid = jnp.logical_or(
                valid, jnp.logical_and(grow == full_rows, lane < lane_rem))
        return valid

    if single_step:
        # Whole slab fits in one block: reduce directly to the (1,1) scale.
        vals = jnp.where(tail_mask(0), bce, 0.0) if needs_tail_mask else bce
        out_ref[...] = jnp.sum(vals, keepdims=True) * inv_count
        return

    c = pl.program_id(0)
    i = pl.program_id(1)
    b = c * tiles_per_core + i

    @pl.when(i == 0)
    def _():
        acc_ref[...] = jnp.zeros_like(acc_ref)

    def accumulate(vals):
        # Fold the tile into an (8,128) vreg accumulator: pure vector adds,
        # no per-step cross-lane reduce.
        acc_ref[...] += jnp.sum(
            vals.reshape(tile_rows // _SUBLANES, _SUBLANES, _LANES), axis=0)

    if needs_tail_mask:
        # Only the block straddling the end of the data pays for the mask.
        is_tail = b >= n_blocks - 1

        @pl.when(jnp.logical_not(is_tail))
        def _():
            accumulate(bce)

        @pl.when(is_tail)
        def _():
            accumulate(jnp.where(tail_mask(b), bce, 0.0))
    else:
        accumulate(bce)

    @pl.when(i == pl.num_programs(1) - 1)
    def _():
        if emit_scalar:
            out_ref[...] = jnp.sum(acc_ref[...], keepdims=True) * inv_count
        else:
            out_ref[...] = acc_ref[...]


# ---------------------------------------------------------------------------
# Pass 2: elementwise focal scaling with a prefolded SMEM scalar:
#   out = scale * |t - sigmoid(x)|**gamma,  scale = alpha * bce_mean
# ---------------------------------------------------------------------------
def _focal_kernel(scale_ref, x_ref, t_ref, o_ref, *, gamma):
    x = x_ref[...].astype(jnp.float32)
    t = t_ref[...].astype(jnp.float32)
    # sigmoid(x) = 0.5*tanh(0.5*x) + 0.5 : single EUP op (no exp + divide).
    sig = 0.5 * jnp.tanh(0.5 * x) + 0.5
    diff = jnp.abs(t - sig)
    if gamma == 2.0:
        p = diff * diff                            # VPU only, no EUP pow
    elif float(gamma) == int(gamma) and gamma >= 0:
        p = lax.integer_pow(diff, int(gamma))
    else:
        p = jnp.power(diff, gamma)                 # general fallback
    o_ref[...] = (scale_ref[0, 0] * p).astype(o_ref.dtype)


def focal_loss(x, target, *, gamma=GAMMA, alpha=ALPHA):
    """FocalLoss.forward. x, target: float arrays of identical shape."""
    assert x.shape == target.shape
    orig_shape = x.shape
    n_total = x.size
    lane_rem = n_total % _LANES
    rows = _cdiv(n_total, _LANES)
    full_rows = n_total // _LANES

    kind = _device_kind()
    max_tile = _max_tile_rows(kind)
    n_tc = _tensorcores_per_chip(kind)

    # Lane-dense slab.  Only the N % 128 != 0 corner case needs a (tiny) pad;
    # otherwise this reshape is free (no HBM copy).
    def to_slab(a):
        flat = a.reshape(-1)
        if lane_rem:
            flat = jnp.pad(flat, (0, rows * _LANES - n_total))
        return flat.reshape(rows, _LANES)

    x2 = to_slab(x)
    t2 = to_slab(target)

    # --- tiling: block count first, then tile_rows, no row padding ----------
    if rows <= max_tile:
        n_par = 1
        tile_rows = rows               # single block == full slab (any size OK)
        n_blocks = 1
        tiles_per_core = 1
    else:
        n_par = n_tc
        n_blocks_target = _round_up(max(n_par, _cdiv(rows, max_tile)), n_par)
        tile_rows = min(max_tile, _round_up(_cdiv(rows, n_blocks_target), 16))
        n_blocks = _cdiv(rows, tile_rows)
        tiles_per_core = _cdiv(n_blocks, n_par)

    has_excess = n_par * tiles_per_core != n_blocks      # <= 1 duplicate block
    ragged_rows = (rows % tile_rows) != 0
    needs_tail_mask = has_excess or ragged_rows or (lane_rem != 0)
    single_step = (n_par == 1 and tiles_per_core == 1)
    emit_scalar = (n_par == 1)

    itemsize = jnp.dtype(x.dtype).itemsize
    slab_bytes = rows * _LANES * itemsize

    if has_excess:
        def in_map(c, i, T=tiles_per_core, last=n_blocks - 1):
            return (jnp.minimum(c * T + i, last), 0)
    else:
        def in_map(c, i, T=tiles_per_core):
            return (c * T + i, 0)

    bce_kernel = functools.partial(
        _bce_sum_kernel,
        tile_rows=tile_rows, tiles_per_core=tiles_per_core, n_blocks=n_blocks,
        full_rows=full_rows, lane_rem=lane_rem,
        needs_tail_mask=needs_tail_mask, single_step=single_step,
        emit_scalar=emit_scalar, inv_count=float(alpha) / float(n_total))

    if emit_scalar:
        out_shape1 = jax.ShapeDtypeStruct((1, 1), jnp.float32)
        out_spec1 = pl.BlockSpec((1, 1), lambda c, i: (0, 0))
    else:
        out_shape1 = jax.ShapeDtypeStruct((n_par * _SUBLANES, _LANES), jnp.float32)
        out_spec1 = pl.BlockSpec((_SUBLANES, _LANES), lambda c, i: (c, 0))

    # --- pass 1: global BCE sum ----------------------------------------------
    result1 = pl.pallas_call(
        bce_kernel,
        out_shape=out_shape1,
        grid_spec=pltpu.PrefetchScalarGridSpec(
            num_scalar_prefetch=0,
            grid=(n_par, tiles_per_core),
            in_specs=[pl.BlockSpec((tile_rows, _LANES), in_map),
                      pl.BlockSpec((tile_rows, _LANES), in_map)],
            out_specs=out_spec1,
            scratch_shapes=[pltpu.VMEM((_SUBLANES, _LANES), jnp.float32)],
        ),
        compiler_params=pltpu.CompilerParams(
            dimension_semantics=("parallel", "arbitrary"),
            vmem_limit_bytes=_VMEM_LIMIT,
        ),
        cost_estimate=pl.CostEstimate(
            flops=6 * n_total, transcendentals=2 * n_total,
            bytes_accessed=2 * slab_bytes),
    )(x2, t2)

    if emit_scalar:
        scale = result1                      # (1,1) f32, alpha/N already folded
    else:
        # Tiny glue for the 2-TensorCore split: combine per-core partials.
        scale = (jnp.sum(result1) * (float(alpha) / float(n_total))
                 ).reshape(1, 1).astype(jnp.float32)

    # --- pass 2: elementwise focal factor * scalar scale ---------------------
    out2 = pl.pallas_call(
        functools.partial(_focal_kernel, gamma=gamma),
        out_shape=jax.ShapeDtypeStruct((rows, _LANES), x.dtype),
        grid_spec=pltpu.PrefetchScalarGridSpec(
            num_scalar_prefetch=0,
            grid=(n_blocks,),
            in_specs=[
                pl.BlockSpec(memory_space=pltpu.MemorySpace.SMEM),  # (1,1) scale
                pl.BlockSpec((tile_rows, _LANES), lambda i: (i, 0)),
                pl.BlockSpec((tile_rows, _LANES), lambda i: (i, 0)),
            ],
            out_specs=pl.BlockSpec((tile_rows, _LANES), lambda i: (i, 0)),
        ),
        compiler_params=pltpu.CompilerParams(
            dimension_semantics=("arbitrary",),
            vmem_limit_bytes=_VMEM_LIMIT,
        ),
        cost_estimate=pl.CostEstimate(
            flops=5 * n_total, transcendentals=n_total,
            bytes_accessed=3 * slab_bytes),
    )(scale, x2, t2)

    if lane_rem:
        return out2.reshape(-1)[:n_total].reshape(orig_shape)
    return out2.reshape(orig_shape)


def _focal_loss_ref(x, target, *, gamma=GAMMA, alpha=ALPHA):
    """Pure-JAX reference matching the PyTorch module."""
    x = x.astype(jnp.float32)
    t = target.astype(jnp.float32)
    bce = jnp.maximum(x, 0.0) - x * t + jnp.log1p(jnp.exp(-jnp.abs(x)))
    loss = jnp.mean(bce)
    return loss * alpha * jnp.power(jnp.abs(t - jax.nn.sigmoid(x)), gamma)


if __name__ == "__main__":
    key = jax.random.PRNGKey(0)
    fl = jax.jit(focal_loss)

    # Primary small test: [B, C, H, W] = [2, 4, 16, 16] (single-block fast path).
    k1, k2 = jax.random.split(key)
    x = jax.random.normal(k1, (2, 4, 16, 16), dtype=jnp.float32)
    target = (jax.random.uniform(k2, (2, 4, 16, 16)) > 0.5).astype(jnp.float32)
    out = jax.block_until_ready(fl(x, target))
    ref = _focal_loss_ref(x, target)
    assert out.shape == x.shape
    assert jnp.allclose(out, ref, rtol=1e-5, atol=1e-6), "mismatch (small)"

    # Odd shape (not a multiple of 128): exercises the lane-tail mask path.
    k3, k4 = jax.random.split(k1)
    xo = jax.random.normal(k3, (2, 3, 13, 13), dtype=jnp.float32)
    to = (jax.random.uniform(k4, (2, 3, 13, 13)) > 0.5).astype(jnp.float32)
    out_o = jax.block_until_ready(fl(xo, to))
    assert jnp.allclose(out_o, _focal_loss_ref(xo, to), rtol=1e-5, atol=1e-6), \
        "mismatch (odd shape)"

    # Larger YOLO-head-like shape: exercises multi-tile accumulation and the
    # ragged last-row-block masking (and the megacore split on 2-TC chips).
    k5, k6 = jax.random.split(k2)
    xl = jax.random.normal(k5, (2, 24, 76, 76), dtype=jnp.float32)
    tl = (jax.random.uniform(k6, (2, 24, 76, 76)) > 0.5).astype(jnp.float32)
    out_l = jax.block_until_ready(fl(xl, tl))
    assert jnp.allclose(out_l, _focal_loss_ref(xl, tl), rtol=1e-4, atol=1e-5), \
        "mismatch (large shape)"

    print("KERNEL_OK")
</pallas_src>

<mosaic_0001>
module attributes {stable_mosaic.version = 11 : i64} {
  func.func @_bce_sum_kernel(%arg0: i32, %arg1: i32, %arg2: memref<16x128xf32, #tpu.memory_space<vmem>>, %arg3: memref<16x128xf32, #tpu.memory_space<vmem>>, %arg4: memref<1x1xf32, #tpu.memory_space<vmem>>, %arg5: memref<8x128xf32, #tpu.memory_space<vmem>>) attributes {dimension_semantics = [#tpu.dimension_semantics<parallel>, #tpu.dimension_semantics<arbitrary>], iteration_bounds = array<i64: 1, 1>, scalar_prefetch = 0 : i64, scratch_operands = 1 : i64, tpu.core_type = #tpu.core_type<tc>, window_params = [{transform_indices = @transform_0, window_bounds = array<i64: 16, 128>}, {transform_indices = @transform_1, window_bounds = array<i64: 16, 128>}, {pipeline_mode = #tpu.pipeline_mode<synchronous>, transform_indices = @transform_2, window_bounds = array<i64: 1, 1>}]} {
    %c0 = arith.constant 0 : index
    %c0_0 = arith.constant 0 : index
    %0 = vector.load %arg2[%c0, %c0_0] : memref<16x128xf32, #tpu.memory_space<vmem>>, vector<16x128xf32>
    %c0_1 = arith.constant 0 : index
    %c0_2 = arith.constant 0 : index
    %1 = vector.load %arg3[%c0_1, %c0_2] : memref<16x128xf32, #tpu.memory_space<vmem>>, vector<16x128xf32>
    %cst = arith.constant 0.000000e+00 : f32
    %2 = vector.broadcast %cst : f32 to vector<16x128xf32>
    %3 = arith.maximumf %0, %2 : vector<16x128xf32>
    %4 = arith.mulf %0, %1 : vector<16x128xf32>
    %5 = arith.subf %3, %4 : vector<16x128xf32>
    %6 = math.absf %0 : vector<16x128xf32>
    %cst_3 = arith.constant 0.000000e+00 : f32
    %7 = vector.broadcast %cst_3 : f32 to vector<16x128xf32>
    %8 = arith.subf %7, %6 : vector<16x128xf32>
    %9 = math.exp %8 : vector<16x128xf32>
    %10 = math.log1p %9 : vector<16x128xf32>
    %11 = arith.addf %5, %10 : vector<16x128xf32>
    %12 = vector.shape_cast %11 : vector<16x128xf32> to vector<1x16x128xf32>
    %cst_4 = arith.constant dense<0.000000e+00> : vector<1xf32>
    %13 = vector.multi_reduction <add>, %12, %cst_4 [1, 2] : vector<1x16x128xf32> to vector<1xf32>
    %14 = vector.shape_cast %13 : vector<1xf32> to vector<1x1x1xf32>
    %15 = vector.extract %14[0, 0, 0] : f32 from vector<1x1x1xf32>
    %16 = vector.broadcast %15 : f32 to vector<1x1xf32>
    %cst_5 = arith.constant 4.8828125E-4 : f32
    %17 = vector.broadcast %cst_5 : f32 to vector<1x1xf32>
    %18 = arith.mulf %16, %17 : vector<1x1xf32>
    %c0_6 = arith.constant 0 : index
    %c0_7 = arith.constant 0 : index
    %19 = vector.load %arg4[%c0_6, %c0_7] : memref<1x1xf32, #tpu.memory_space<vmem>>, vector<1x1xf32>
    tpu.vector_store %arg4[%c0_6, %c0_7], %18 {strides = array<i32>} : memref<1x1xf32, #tpu.memory_space<vmem>>, vector<1x1xf32>,
    return
  }
  func.func @transform_0(%arg0: i32, %arg1: i32) -> (i32, i32) {
    %c1_i32 = arith.constant 1 : i32
    %0 = arith.muli %arg0, %c1_i32 : i32
    %1 = arith.addi %0, %arg1 : i32
    %c0_i32 = arith.constant 0 : i32
    %c0_i32_0 = arith.constant 0 : i32
    return %1, %c0_i32 : i32, i32
  }
  func.func @transform_1(%arg0: i32, %arg1: i32) -> (i32, i32) {
    %c1_i32 = arith.constant 1 : i32
    %0 = arith.muli %arg0, %c1_i32 : i32
    %1 = arith.addi %0, %arg1 : i32
    %c0_i32 = arith.constant 0 : i32
    %c0_i32_0 = arith.constant 0 : i32
    return %1, %c0_i32 : i32, i32
  }
  func.func @transform_2(%arg0: i32, %arg1: i32) -> (i32, i32) {
    %c0_i32 = arith.constant 0 : i32
    %c0_i32_0 = arith.constant 0 : i32
    %c0_i32_1 = arith.constant 0 : i32
    return %c0_i32, %c0_i32_0 : i32, i32
  }
}

module attributes {stable_mosaic.version = 11 : i64} {
  func.func @_focal_kernel(%arg0: i32, %arg1: memref<1x1xf32, #tpu.memory_space<smem>>, %arg2: memref<16x128xf32, #tpu.memory_space<vmem>>, %arg3: memref<16x128xf32, #tpu.memory_space<vmem>>, %arg4: memref<16x128xf32, #tpu.memory_space<vmem>>) attributes {dimension_semantics = [#tpu.dimension_semantics<arbitrary>], iteration_bounds = array<i64: 1>, scalar_prefetch = 0 : i64, scratch_operands = 0 : i64, tpu.core_type = #tpu.core_type<tc>, window_params = [{transform_indices = @transform_0, window_bounds = array<i64: 1, 1>}, {transform_indices = @transform_1, window_bounds = array<i64: 16, 128>}, {transform_indices = @transform_2, window_bounds = array<i64: 16, 128>}, {transform_indices = @transform_3, window_bounds = array<i64: 16, 128>}]} {
    %c0 = arith.constant 0 : index
    %c0_0 = arith.constant 0 : index
    %0 = vector.load %arg2[%c0, %c0_0] : memref<16x128xf32, #tpu.memory_space<vmem>>, vector<16x128xf32>
    %c0_1 = arith.constant 0 : index
    %c0_2 = arith.constant 0 : index
    %1 = vector.load %arg3[%c0_1, %c0_2] : memref<16x128xf32, #tpu.memory_space<vmem>>, vector<16x128xf32>
    %cst = arith.constant 5.000000e-01 : f32
    %2 = vector.broadcast %cst : f32 to vector<16x128xf32>
    %3 = arith.mulf %2, %0 : vector<16x128xf32>
    %4 = math.tanh %3 : vector<16x128xf32>
    %cst_3 = arith.constant 5.000000e-01 : f32
    %5 = vector.broadcast %cst_3 : f32 to vector<16x128xf32>
    %6 = arith.mulf %5, %4 : vector<16x128xf32>
    %cst_4 = arith.constant 5.000000e-01 : f32
    %7 = vector.broadcast %cst_4 : f32 to vector<16x128xf32>
    %8 = arith.addf %6, %7 : vector<16x128xf32>
    %9 = arith.subf %1, %8 : vector<16x128xf32>
    %10 = math.absf %9 : vector<16x128xf32>
    %11 = arith.mulf %10, %10 : vector<16x128xf32>
    %c0_5 = arith.constant 0 : index
    %c0_6 = arith.constant 0 : index
    %12 = memref.load %arg1[%c0_5, %c0_6] : memref<1x1xf32, #tpu.memory_space<smem>>
    %13 = vector.broadcast %12 : f32 to vector<16x128xf32>
    %14 = arith.mulf %13, %11 : vector<16x128xf32>
    %c0_7 = arith.constant 0 : index
    %c0_8 = arith.constant 0 : index
    %15 = vector.load %arg4[%c0_7, %c0_8] : memref<16x128xf32, #tpu.memory_space<vmem>>, vector<16x128xf32>
    tpu.vector_store %arg4[%c0_7, %c0_8], %14 {strides = array<i32>} : memref<16x128xf32, #tpu.memory_space<vmem>>, vector<16x128xf32>,
    return
  }
  func.func @transform_0(%arg0: i32) -> (i32, i32) {
    %c0_i32 = arith.constant 0 : i32
    %c0_i32_0 = arith.constant 0 : i32
    %c0_i32_1 = arith.constant 0 : i32
    return %c0_i32, %c0_i32_0 : i32, i32
  }
  func.func @transform_1(%arg0: i32) -> (i32, i32) {
    %c0_i32 = arith.constant 0 : i32
    %c0_i32_0 = arith.constant 0 : i32
    return %arg0, %c0_i32 : i32, i32
  }
  func.func @transform_2(%arg0: i32) -> (i32, i32) {
    %c0_i32 = arith.constant 0 : i32
    %c0_i32_0 = arith.constant 0 : i32
    return %arg0, %c0_i32 : i32, i32
  }
  func.func @transform_3(%arg0: i32) -> (i32, i32) {
    %c0_i32 = arith.constant 0 : i32
    %c0_i32_0 = arith.constant 0 : i32
    return %arg0, %c0_i32 : i32, i32
  }
}

</mosaic_0001>

<bundles_post_ra>
// kernel: focal_loss.2
= control target key start
LH: loop header
LB: loop body
LE: loop exit
PB: predicated region body
PF: predicated region fallthrough
CT: control target
= control target key end

     0   :  { %s209_s0 = inlined_call_operand.vmem [shape: f32[16,128], index: 0, kind: input, shape index: {}]   ;;  %s210_s1 = inlined_call_operand.vmem [shape: f32[16,128], index: 1, kind: input, shape index: {}]   ;;  %s211_s2 = inlined_call_operand.hbm [shape: f32[1,1], index: 2, kind: output, shape index: {}]  }
   0x1   :  { %v56_v0 = vld [vmem:[%s209_s0] sm:$0xff]  ;;  %v57_v1 = vld [vmem:[%s209_s0 + $0x8] sm:$0xff] }
   0x2   :  { %v66_v2 = vand.u32 2147483647, %v56_v0  ;;  %v67_v3 = vand.u32 2147483647, %v57_v1 }
   0x3   :  { %7 = vsyncpa [#allocation4], 0  ;;  %v58_v14 = vld [vmem:[%s210_s1] sm:$0xff]  ;;  %v59_v15 = vld [vmem:[%s210_s1 + $0x8] sm:$0xff]  ;;  %v60_v17 = vmax.f32 %v56_v0, 0.0  ;;  %v61_v21 = vmax.f32 %v57_v1, 0.0 }
   0x4   :  { %v68_v4 = vsub.f32 0.0, %v66_v2  ;;  %v69_v5 = vsub.f32 0.0, %v67_v3  ;;  %v62_v18 = vmul.f32 %v58_v14, %v56_v0  ;;  %v63_v22 = vmul.f32 %v59_v15, %v57_v1  ;;  %s169_s1 = smov [#allocation3]  }
   0x5   :  { %s114_s16 = sshll.u32 %s169_s1, 4  ;;  %vm106_vm2 = vcmask 0   ;;  %s115_s16 = int_to_ptr.vmem [resolvable:$true] %s114_s16 }
   0x6   :  { %v70_v6 = vmul.f32 1.442695, %v68_v4  ;;  %v72_v7 = vmul.f32 1.442695, %v69_v5  ;;  %v64_v26 = vsub.f32 %v60_v17, %v62_v18  ;;  %v65_v29 = vsub.f32 %v61_v21, %v63_v22  ;;  %s145_s18 = scalar_lea.vmem %s115_s16, 16  ;;  %s149_s19 = scalar_lea.vmem %s115_s16, 32 }
   0x7   :  { %p146_p0 = scmp.ne.s32.totalorder %s115_s16, %s145_s18  ;;  %p150_p1 = scmp.lt.s32.totalorder %s115_s16, %s115_s16 }
   0x8   :  { %137 = vpow2.f32 %v70_v6  ;;  %p151_p2 = scmp.lt.s32.totalorder %s149_s19, %s145_s18 }
   0x9   :  { %139 = vpow2.f32 %v72_v7 }
   0xa   :  { %p152_p3 = por %p151_p2, %p150_p1 }
   0xc   :  { %p153_p4 = pnand %p152_p3, %p146_p0 }
  0x12   :  { %v138_v8 = vpop.eup %137 }
  0x13   :  { %v140_v9 = vpop.eup %139  ;;  %v74_v10 = vadd.f32 1.0, %v138_v8  ;;  %v77_v12 = vmul.f32 -0.5, %v138_v8  ;;  %v80_v19 = vand.u32 2147483647, %v138_v8 }
  0x14   :  { %v83_v11 = vadd.f32 1.0, %v140_v9  ;;  %v86_v13 = vmul.f32 -0.5, %v140_v9  ;;  %v89_v23 = vand.u32 2147483647, %v140_v9 }
  0x15   :  { %141 = vlog2.f32 %v74_v10  ;;  %v78_v16 = vadd.f32 1.0, %v77_v12  ;;  %vm81_vm0 = vcmp.lt.f32.partialorder %v80_v19, 0.0004427343 }
  0x16   :  { %143 = vlog2.f32 %v83_v11  ;;  %v87_v20 = vadd.f32 1.0, %v86_v13  ;;  %vm90_vm1 = vcmp.lt.f32.partialorder %v89_v23, 0.0004427343 }
  0x17   :  { %v79_v24 = vmul.f32 %v138_v8, %v78_v16 }
  0x18   :  { %v88_v27 = vmul.f32 %v140_v9, %v87_v20 }
  0x1f   :  { %v142_v25 = vpop.eup %141 }
  0x20   :  { %v144_v28 = vpop.eup %143  ;;  %v76_v30 = vmul.f32 0.6931472, %v142_v25 }
  0x21   :  { %v85_v31 = vmul.f32 0.6931472, %v144_v28 }
  0x22   :  { %v82_v32 = vsel %vm81_vm0, %v79_v24, %v76_v30 }
  0x23   :  { %v91_v33 = vsel %vm90_vm1, %v88_v27, %v85_v31  ;;  %v92_v34 = vadd.f32 %v82_v32, %v64_v26 }
  0x24   :  { %v93_v35 = vadd.f32 %v91_v33, %v65_v29 }
  0x26   :  { %v94_v36 = vadd.f32 %v93_v35, %v92_v34 }
  0x28   :  { %95 = vadd.xlane.f32.xlu0 %v94_v36 }
  0xb5   :  { %v96_v37 = vpop.xlane.xlu0 %95 }
  0xb6   :  { %v97_v38 = vrot.slane %v96_v37, 4 }
  0xb8   :  { %v98_v39 = vadd.f32 %v97_v38, %v96_v37 }
  0xba   :  { %v99_v40 = vrot.slane %v98_v39, 2 }
  0xbc   :  { %v100_v41 = vadd.f32 %v99_v40, %v98_v39 }
  0xbe   :  { %v101_v42 = vrot.slane %v100_v41, 1 }
  0xc0   :  { %v102_v43 = vadd.f32 %v101_v42, %v100_v41 }
  0xc2   :  { %134 = vpush %v102_v43 }
  0xf3   :  { %s135_s17 = spop %134 }
  0xf4   :  { %v104_v44 = vstv %s135_s17 }
  0xf5   :  { %v105_v45 = vmul.f32 0.00048828125, %v104_v44 }
  0xf7   :  { %107 = vst.msk [vmem:[#allocation3] sm:$0x1] %vm106_vm2, %v105_v45 }
  0xf8   :  { %156 = shalt.err (!%p153_p4)
}
  0xf9   :  { %s157_s22 = scalar_lea.hbm %s211_s2, 16 }
  0xfa   :  { %p158_p5 = scmp.ne.s32.totalorder %s211_s2, %s157_s22  ;;  %p161_p6 = scmp.lt.u32.totalorder %s157_s22, %s211_s2 }
  0xfc   :  { %p163_p7 = pnand %p161_p6, %p158_p5 }
  0xfe   :  { %166 = shalt.err (!%p163_p7)
}
  0xff   :  { %117 = dma.vmem_to_hbm [thread:$0]  %s115_s16, 16, %s211_s2, [#allocation4]  }
 0x100   :  { %167 = dma.done.wait [#allocation4], 16  }
 0x101   :  { %168 = vsyncadd [#allocation4], 4294967280 }
 0x102   :  { %121 = vsyncpa [#allocation4], 1 }

// kernel: focal_loss.3
= control target key start
LH: loop header
LB: loop body
LE: loop exit
PB: predicated region body
PF: predicated region fallthrough
CT: control target
= control target key end

     0   :  { %s88_s1 = inlined_call_operand.vmem [shape: f32[16,128], index: 1, kind: input, shape index: {}]   ;;  %s89_s2 = inlined_call_operand.vmem [shape: f32[16,128], index: 2, kind: input, shape index: {}]   ;;  %s90_s0 = inlined_call_operand.<no memory space> [shape: f32[1,1], index: 0, kind: input, shape index: {}]   ;;  %s91_s3 = inlined_call_operand.vmem [shape: f32[16,128], index: 3, kind: output, shape index: {}]  }
   0x1   :  { %v15_v0 = vld [vmem:[%s88_s1] sm:$0xff]  ;;  %v16_v1 = vld [vmem:[%s88_s1 + $0x8] sm:$0xff]  ;;  %v34_v15 = vstv %s90_s0 }
   0x2   :  { %v19_v2 = vmul.f32 0.5, %v15_v0  ;;  %v20_v3 = vmul.f32 0.5, %v16_v1  ;;  %v17_v7 = vld [vmem:[%s89_s2] sm:$0xff]  ;;  %v18_v10 = vld [vmem:[%s89_s2 + $0x8] sm:$0xff] }
   0x4   :  { %43 = vtanh.f32 %v19_v2 }
   0x5   :  { %45 = vtanh.f32 %v20_v3 }
   0xe   :  { %v44_v4 = vpop.eup %43 }
   0xf   :  { %v46_v5 = vpop.eup %45  ;;  %v23_v6 = vmul.f32 0.5, %v44_v4 }
  0x10   :  { %v24_v8 = vmul.f32 0.5, %v46_v5 }
  0x11   :  { %v25_v9 = vadd.f32 0.5, %v23_v6 }
  0x12   :  { %v26_v11 = vadd.f32 0.5, %v24_v8 }
  0x13   :  { %v27_v12 = vsub.f32 %v17_v7, %v25_v9 }
  0x14   :  { %v28_v13 = vsub.f32 %v18_v10, %v26_v11 }
  0x15   :  { %v29_v14 = vand.u32 2147483647, %v27_v12 }
  0x16   :  { %v30_v16 = vand.u32 2147483647, %v28_v13 }
  0x17   :  { %v31_v17 = vmul.f32 %v29_v14, %v29_v14 }
  0x18   :  { %v32_v18 = vmul.f32 %v30_v16, %v30_v16 }
  0x19   :  { %v35_v19 = vmul.f32 %v34_v15, %v31_v17 }
  0x1a   :  { %v36_v20 = vmul.f32 %v34_v15, %v32_v18 }
  0x1b   :  { %37 = vst [vmem:[%s91_s3] sm:$0xff] %v35_v19 }
  0x1c   :  { %38 = vst [vmem:[%s91_s3 + $0x8] sm:$0xff] %v36_v20 }

</bundles_post_ra>
